<compile_context>
chip_gen: v5e
topology: v5e:2x2
jax: 0.10.0
libtpu: 0.0.40
codegen_flags: <defaults>
</compile_context>

<pallas_src>
import functools
import math

import jax
import jax.numpy as jnp
from jax.experimental import pallas as pl
from jax.experimental.pallas import tpu as pltpu


# ----------------------------- shared math helpers ---------------------------

def _layer_norm(x, gamma, beta, eps):
    # Matches BertLayerNorm: biased variance over the last dim, f32 math.
    mu = jnp.mean(x, axis=-1, keepdims=True)
    var = jnp.mean((x - mu) ** 2, axis=-1, keepdims=True)
    return (x - mu) / jnp.sqrt(var + eps) * gamma + beta


def _gelu(x):
    # Exact (erf-based) gelu, matching the PyTorch reference.
    return x * 0.5 * (1.0 + jax.scipy.special.erf(x / jnp.sqrt(jnp.float32(2.0))))


PREPARED_ORDER = ("wq", "bq", "wkv", "bkv",
                  "wo", "bo", "g1", "b1",
                  "wi", "bi", "wo2", "bo2", "g2", "b2")


# --------------------------------- kernel ------------------------------------

def bert_layer_kernel(xq_ref, xkv_ref, mask_ref,
                      wq_ref, bq_ref, wkv_ref, bkv_ref,
                      wo_ref, bo_ref, g1_ref, b1_ref,
                      wi_ref, bi_ref, wo2_ref, bo2_ref, g2_ref, b2_ref,
                      out_ref, *, num_heads, head_dim, eps):
    f32 = jnp.float32
    bf16 = jnp.bfloat16
    H = num_heads * head_dim

    x_res = xq_ref[0].astype(f32)            # (TQ, H)  residual path in f32
    xq = x_res.astype(bf16)                  # bf16 operand for the MXU
    xkv = xkv_ref[0].astype(bf16)            # (S, H)   full sequence for K/V
    mask = mask_ref[0, 0].astype(f32)        # (1, S)   additive mask

    # --- projections: bf16 MXU matmuls, f32 accumulation ---
    # Q: the 1/sqrt(head_dim) scale is pre-folded into wq/bq by the wrapper.
    q = jnp.dot(xq, wq_ref[...], preferred_element_type=f32) + bq_ref[...]     # (TQ, H)
    # Fused K|V projection over the full sequence block.
    kv = jnp.dot(xkv, wkv_ref[...], preferred_element_type=f32) + bkv_ref[...]  # (S, 2H)

    # --- head-major tensors (nh, rows, head_dim) ---
    # Mosaic has no cheap in-register (rows, nh*hd) -> (nh, rows, hd) transpose,
    # so the heads are split with static lane slices stacked along a new leading
    # (untiled) axis once; the attention math itself is fully batched over heads
    # (no per-head unrolled softmax / matmuls).
    # TODO(synk): replace the lane-split with a relayout-free head-major path
    # once Mosaic supports the (rows, nh*hd) -> (nh, rows, hd) reshape+transpose.
    q3 = jnp.stack([q[:, h * head_dim:(h + 1) * head_dim]
                    for h in range(num_heads)], axis=0)                          # (nh, TQ, hd)
    k3 = jnp.stack([kv[:, h * head_dim:(h + 1) * head_dim]
                    for h in range(num_heads)], axis=0)                          # (nh, S, hd)
    v3 = jnp.stack([kv[:, H + h * head_dim:H + (h + 1) * head_dim]
                    for h in range(num_heads)], axis=0)                          # (nh, S, hd)

    # --- batched scaled-dot-product attention (f32 softmax) ---
    s = jnp.einsum("nqd,nkd->nqk", q3.astype(bf16), k3.astype(bf16),
                   preferred_element_type=f32)                                   # (nh, TQ, S)
    s = s + mask[None]                       # broadcast (1, 1, S) over heads/queries
    s = s - jnp.max(s, axis=-1, keepdims=True)
    p = jnp.exp(s)
    probs = p * pl.reciprocal(jnp.sum(p, axis=-1, keepdims=True), approx=True)

    ctx3 = jnp.einsum("nqk,nkd->nqd", probs.astype(bf16), v3.astype(bf16),
                      preferred_element_type=f32)                                # (nh, TQ, hd)
    ctx = jnp.concatenate([ctx3[h] for h in range(num_heads)], axis=-1)           # (TQ, H)

    # --- attention output: dense + residual + LayerNorm (f32) ---
    attn = jnp.dot(ctx.astype(bf16), wo_ref[...],
                   preferred_element_type=f32) + bo_ref[...]
    attn = _layer_norm(attn + x_res, g1_ref[...], b1_ref[...], eps)

    # --- feed-forward: dense -> exact erf GELU -> dense + residual + LayerNorm ---
    inter = _gelu(jnp.dot(attn.astype(bf16), wi_ref[...],
                          preferred_element_type=f32) + bi_ref[...])
    ffn = jnp.dot(inter.astype(bf16), wo2_ref[...],
                  preferred_element_type=f32) + bo2_ref[...]
    out = _layer_norm(ffn + attn, g2_ref[...], b2_ref[...], eps)

    out_ref[0] = out.astype(out_ref.dtype)


# ------------------------------ pallas wrapper --------------------------------

def prepare_layer_params(p, *, num_heads):
    """Cast weights to bf16, fold the attention scale into wq/bq, fuse K|V."""
    H = p["wq"].shape[0]
    scale = 1.0 / math.sqrt(H // num_heads)
    f32 = jnp.float32
    return {
        "wq": (p["wq"] * scale).astype(jnp.bfloat16),
        "bq": (p["bq"] * scale).astype(f32),
        "wkv": jnp.concatenate([p["wk"], p["wv"]], axis=1).astype(jnp.bfloat16),
        "bkv": jnp.concatenate([p["bk"], p["bv"]], axis=1).astype(f32),
        "wo": p["wo"].astype(jnp.bfloat16), "bo": p["bo"].astype(f32),
        "g1": p["g1"].astype(f32), "b1": p["b1"].astype(f32),
        "wi": p["wi"].astype(jnp.bfloat16), "bi": p["bi"].astype(f32),
        "wo2": p["wo2"].astype(jnp.bfloat16), "bo2": p["bo2"].astype(f32),
        "g2": p["g2"].astype(f32), "b2": p["b2"].astype(f32),
    }


def bert_layer(hidden, mask, prepared, *, num_heads, eps=1e-12,
               seq_tile=None, out_dtype=jnp.bfloat16):
    B, S, H = hidden.shape
    if seq_tile is None or seq_tile >= S:
        seq_tile = S                       # single query tile (toy shapes)
    else:
        # Real sizes: pick e.g. 256 on v7x (64 MiB VMEM) / 512 on v6e,
        # with seq_tile % 8 == 0 and H % 128 == 0 for lane-dense stores.
        assert S % seq_tile == 0 and seq_tile % 8 == 0
    nqt = S // seq_tile

    kernel = functools.partial(bert_layer_kernel, num_heads=num_heads,
                               head_dim=H // num_heads, eps=eps)
    param_list = [prepared[name] for name in PREPARED_ORDER]

    def full_spec(arr):
        nd = arr.ndim
        return pl.BlockSpec(arr.shape, lambda b, qi, _nd=nd: (0,) * _nd)

    in_specs = ([pl.BlockSpec((1, seq_tile, H), lambda b, qi: (b, qi, 0)),   # query tile
                 pl.BlockSpec((1, S, H), lambda b, qi: (b, 0, 0)),            # full seq (K/V)
                 pl.BlockSpec((1, 1, 1, S), lambda b, qi: (b, 0, 0, 0))]      # additive mask
                + [full_spec(p) for p in param_list])
    out_spec = pl.BlockSpec((1, seq_tile, H), lambda b, qi: (b, qi, 0))

    return pl.pallas_call(
        kernel,
        grid=(B, nqt),
        in_specs=in_specs,
        out_specs=out_spec,
        out_shape=jax.ShapeDtypeStruct((B, S, H), out_dtype),
        compiler_params=pltpu.CompilerParams(
            dimension_semantics=("parallel", "parallel"),
            vmem_limit_bytes=48 * 1024 * 1024),   # raised vs 16/32 MiB defaults
    )(hidden, hidden, mask, *param_list)


def bert_encoder(hidden, mask, layer_params_list, *, num_heads, eps=1e-12,
                 seq_tile=None, output_all_encoded_layers=True):
    prepared_list = [prepare_layer_params(p, num_heads=num_heads)
                     for p in layer_params_list]
    all_encoder_layers = []
    # Hidden states are carried layer-to-layer in bf16 (halved HBM traffic).
    for prepared in prepared_list:
        hidden = bert_layer(hidden, mask, prepared, num_heads=num_heads,
                            eps=eps, seq_tile=seq_tile)
        if output_all_encoded_layers:
            all_encoder_layers.append(hidden)
    if not output_all_encoded_layers:
        all_encoder_layers.append(hidden)
    return all_encoder_layers


# ------------------------------ pure-JAX reference -----------------------------

def bert_layer_ref(x, mask, p, *, num_heads, eps=1e-12):
    B, S, H = x.shape
    dh = H // num_heads
    q = x @ p["wq"] + p["bq"]
    k = x @ p["wk"] + p["bk"]
    v = x @ p["wv"] + p["bv"]
    q = q.reshape(B, S, num_heads, dh).transpose(0, 2, 1, 3)
    k = k.reshape(B, S, num_heads, dh).transpose(0, 2, 1, 3)
    v = v.reshape(B, S, num_heads, dh).transpose(0, 2, 1, 3)
    scores = jnp.einsum("bhqd,bhkd->bhqk", q, k) / math.sqrt(dh) + mask
    probs = jax.nn.softmax(scores, axis=-1)
    ctx = jnp.einsum("bhqk,bhkd->bhqd", probs, v)
    ctx = ctx.transpose(0, 2, 1, 3).reshape(B, S, H)
    attn = _layer_norm(ctx @ p["wo"] + p["bo"] + x, p["g1"], p["b1"], eps)
    inter = _gelu(attn @ p["wi"] + p["bi"])
    out = _layer_norm(inter @ p["wo2"] + p["bo2"] + attn, p["g2"], p["b2"], eps)
    return out


def bert_encoder_ref(hidden, mask, layer_params_list, *, num_heads, eps=1e-12):
    outs = []
    for p in layer_params_list:
        hidden = bert_layer_ref(hidden, mask, p, num_heads=num_heads, eps=eps)
        outs.append(hidden)
    return outs


# -------------------------------- param init ----------------------------------

def init_bert_layer_params(key, hidden_size, intermediate_size):
    ks = jax.random.split(key, 8)
    H, I = hidden_size, intermediate_size
    nrm = lambda k, shape: (0.02 * jax.random.normal(k, shape)).astype(jnp.float32)
    return {
        "wq": nrm(ks[0], (H, H)), "bq": jnp.zeros((1, H), jnp.float32),
        "wk": nrm(ks[1], (H, H)), "bk": jnp.zeros((1, H), jnp.float32),
        "wv": nrm(ks[2], (H, H)), "bv": jnp.zeros((1, H), jnp.float32),
        "wo": nrm(ks[3], (H, H)), "bo": jnp.zeros((1, H), jnp.float32),
        "g1": jnp.ones((1, H), jnp.float32), "b1": jnp.zeros((1, H), jnp.float32),
        "wi": nrm(ks[4], (H, I)), "bi": jnp.zeros((1, I), jnp.float32),
        "wo2": nrm(ks[5], (I, H)), "bo2": jnp.zeros((1, H), jnp.float32),
        "g2": jnp.ones((1, H), jnp.float32), "b2": jnp.zeros((1, H), jnp.float32),
    }


# ------------------------------------ main -------------------------------------

if __name__ == "__main__":
    B, S, H = 2, 8, 32
    NUM_HEADS = 4
    INTERMEDIATE = 64
    NUM_LAYERS = 2
    EPS = 1e-12

    key = jax.random.PRNGKey(0)
    k_hidden, k_params = jax.random.split(key)

    hidden = jax.random.normal(k_hidden, (B, S, H), dtype=jnp.float32)

    # Additive attention mask (B, 1, 1, S): second example padded to length 5.
    valid = jnp.array([[1.0] * S, [1.0] * 5 + [0.0] * 3], dtype=jnp.float32)
    attention_mask = ((1.0 - valid) * -10000.0).reshape(B, 1, 1, S)

    # deepcopy in the PyTorch module => every layer starts with identical weights.
    layer_params = init_bert_layer_params(k_params, H, INTERMEDIATE)
    layer_params_list = [layer_params] * NUM_LAYERS

    outs = bert_encoder(hidden, attention_mask, layer_params_list,
                        num_heads=NUM_HEADS, eps=EPS,
                        output_all_encoded_layers=True)
    outs = [jax.block_until_ready(o) for o in outs]

    # Cross-check against the f32 pure-JAX reference (kernel runs bf16 matmuls
    # and carries bf16 hidden states, so allow bf16-level tolerance).
    refs = bert_encoder_ref(hidden, attention_mask, layer_params_list,
                            num_heads=NUM_HEADS, eps=EPS)
    for o, r in zip(outs, refs):
        assert o.shape == (B, S, H)
        err = float(jnp.max(jnp.abs(o.astype(jnp.float32) - r)))
        assert err < 5e-2, f"mismatch vs reference: max abs err = {err}"

    print("KERNEL_OK")
</pallas_src>

<mosaic_0001>
module attributes {stable_mosaic.version = 11 : i64} {
  func.func @bert_layer_kernel(%arg0: i32, %arg1: i32, %arg2: memref<1x8x32xf32, #tpu.memory_space<vmem>>, %arg3: memref<1x8x32xf32, #tpu.memory_space<vmem>>, %arg4: memref<1x1x1x8xf32, #tpu.memory_space<vmem>>, %arg5: memref<32x32xbf16, #tpu.memory_space<vmem>>, %arg6: memref<1x32xf32, #tpu.memory_space<vmem>>, %arg7: memref<32x64xbf16, #tpu.memory_space<vmem>>, %arg8: memref<1x64xf32, #tpu.memory_space<vmem>>, %arg9: memref<32x32xbf16, #tpu.memory_space<vmem>>, %arg10: memref<1x32xf32, #tpu.memory_space<vmem>>, %arg11: memref<1x32xf32, #tpu.memory_space<vmem>>, %arg12: memref<1x32xf32, #tpu.memory_space<vmem>>, %arg13: memref<32x64xbf16, #tpu.memory_space<vmem>>, %arg14: memref<1x64xf32, #tpu.memory_space<vmem>>, %arg15: memref<64x32xbf16, #tpu.memory_space<vmem>>, %arg16: memref<1x32xf32, #tpu.memory_space<vmem>>, %arg17: memref<1x32xf32, #tpu.memory_space<vmem>>, %arg18: memref<1x32xf32, #tpu.memory_space<vmem>>, %arg19: memref<1x8x32xbf16, #tpu.memory_space<vmem>>) attributes {dimension_semantics = [#tpu.dimension_semantics<parallel>, #tpu.dimension_semantics<parallel>], iteration_bounds = array<i64: 2, 1>, scalar_prefetch = 0 : i64, scratch_operands = 0 : i64, tpu.core_type = #tpu.core_type<tc>, window_params = [{transform_indices = @transform_0, window_bounds = array<i64: 1, 8, 32>}, {transform_indices = @transform_1, window_bounds = array<i64: 1, 8, 32>}, {transform_indices = @transform_2, window_bounds = array<i64: 1, 1, 1, 8>}, {pipeline_mode = #tpu.pipeline_mode<synchronous>, transform_indices = @transform_3, window_bounds = array<i64: 32, 32>}, {pipeline_mode = #tpu.pipeline_mode<synchronous>, transform_indices = @transform_4, window_bounds = array<i64: 1, 32>}, {pipeline_mode = #tpu.pipeline_mode<synchronous>, transform_indices = @transform_5, window_bounds = array<i64: 32, 64>}, {pipeline_mode = #tpu.pipeline_mode<synchronous>, transform_indices = @transform_6, window_bounds = array<i64: 1, 64>}, {pipeline_mode = #tpu.pipeline_mode<synchronous>, transform_indices = @transform_7, window_bounds = array<i64: 32, 32>}, {pipeline_mode = #tpu.pipeline_mode<synchronous>, transform_indices = @transform_8, window_bounds = array<i64: 1, 32>}, {pipeline_mode = #tpu.pipeline_mode<synchronous>, transform_indices = @transform_9, window_bounds = array<i64: 1, 32>}, {pipeline_mode = #tpu.pipeline_mode<synchronous>, transform_indices = @transform_10, window_bounds = array<i64: 1, 32>}, {pipeline_mode = #tpu.pipeline_mode<synchronous>, transform_indices = @transform_11, window_bounds = array<i64: 32, 64>}, {pipeline_mode = #tpu.pipeline_mode<synchronous>, transform_indices = @transform_12, window_bounds = array<i64: 1, 64>}, {pipeline_mode = #tpu.pipeline_mode<synchronous>, transform_indices = @transform_13, window_bounds = array<i64: 64, 32>}, {pipeline_mode = #tpu.pipeline_mode<synchronous>, transform_indices = @transform_14, window_bounds = array<i64: 1, 32>}, {pipeline_mode = #tpu.pipeline_mode<synchronous>, transform_indices = @transform_15, window_bounds = array<i64: 1, 32>}, {pipeline_mode = #tpu.pipeline_mode<synchronous>, transform_indices = @transform_16, window_bounds = array<i64: 1, 32>}, {transform_indices = @transform_17, window_bounds = array<i64: 1, 8, 32>}]} {
    %c0 = arith.constant 0 : index
    %c0_0 = arith.constant 0 : index
    %c0_1 = arith.constant 0 : index
    %0 = vector.load %arg2[%c0, %c0_0, %c0_1] : memref<1x8x32xf32, #tpu.memory_space<vmem>>, vector<1x8x32xf32>
    %1 = vector.shape_cast %0 : vector<1x8x32xf32> to vector<8x32xf32>
    %2 = arith.truncf %1 : vector<8x32xf32> to vector<8x32xbf16>
    %c0_2 = arith.constant 0 : index
    %c0_3 = arith.constant 0 : index
    %c0_4 = arith.constant 0 : index
    %3 = vector.load %arg3[%c0_2, %c0_3, %c0_4] : memref<1x8x32xf32, #tpu.memory_space<vmem>>, vector<1x8x32xf32>
    %4 = vector.shape_cast %3 : vector<1x8x32xf32> to vector<8x32xf32>
    %5 = arith.truncf %4 : vector<8x32xf32> to vector<8x32xbf16>
    %c0_5 = arith.constant 0 : index
    %c0_6 = arith.constant 0 : index
    %c0_7 = arith.constant 0 : index
    %c0_8 = arith.constant 0 : index
    %6 = vector.load %arg4[%c0_5, %c0_6, %c0_7, %c0_8] : memref<1x1x1x8xf32, #tpu.memory_space<vmem>>, vector<1x1x1x8xf32>
    %7 = vector.shape_cast %6 : vector<1x1x1x8xf32> to vector<1x8xf32>
    %c0_9 = arith.constant 0 : index
    %c0_10 = arith.constant 0 : index
    %8 = vector.load %arg5[%c0_9, %c0_10] : memref<32x32xbf16, #tpu.memory_space<vmem>>, vector<32x32xbf16>
    %cst = arith.constant dense<0.000000e+00> : vector<8x32xf32>
    %9 = tpu.matmul %2, %8, %cst {dimension_numbers = #tpu.dot_dimension_numbers<[1], [0], [0], [1], [0, 0, 1, 1], [], []>} : vector<8x32xbf16>, vector<32x32xbf16>, vector<8x32xf32> -> vector<8x32xf32>
    %c0_11 = arith.constant 0 : index
    %c0_12 = arith.constant 0 : index
    %10 = vector.load %arg6[%c0_11, %c0_12] : memref<1x32xf32, #tpu.memory_space<vmem>>, vector<1x32xf32>
    %11 = vector.broadcast %10 : vector<1x32xf32> to vector<8x32xf32>
    %12 = arith.addf %9, %11 : vector<8x32xf32>
    %c0_13 = arith.constant 0 : index
    %c0_14 = arith.constant 0 : index
    %13 = vector.load %arg7[%c0_13, %c0_14] : memref<32x64xbf16, #tpu.memory_space<vmem>>, vector<32x64xbf16>
    %cst_15 = arith.constant dense<0.000000e+00> : vector<8x64xf32>
    %14 = tpu.matmul %5, %13, %cst_15 {dimension_numbers = #tpu.dot_dimension_numbers<[1], [0], [0], [1], [0, 0, 1, 1], [], []>} : vector<8x32xbf16>, vector<32x64xbf16>, vector<8x64xf32> -> vector<8x64xf32>
    %c0_16 = arith.constant 0 : index
    %c0_17 = arith.constant 0 : index
    %15 = vector.load %arg8[%c0_16, %c0_17] : memref<1x64xf32, #tpu.memory_space<vmem>>, vector<1x64xf32>
    %16 = vector.broadcast %15 : vector<1x64xf32> to vector<8x64xf32>
    %17 = arith.addf %14, %16 : vector<8x64xf32>
    %18 = vector.extract_strided_slice %12 {offsets = [0, 0], sizes = [8, 8], strides = [1, 1]} : vector<8x32xf32> to vector<8x8xf32>
    %19 = vector.extract_strided_slice %12 {offsets = [0, 8], sizes = [8, 8], strides = [1, 1]} : vector<8x32xf32> to vector<8x8xf32>
    %20 = vector.extract_strided_slice %12 {offsets = [0, 16], sizes = [8, 8], strides = [1, 1]} : vector<8x32xf32> to vector<8x8xf32>
    %21 = vector.extract_strided_slice %12 {offsets = [0, 24], sizes = [8, 8], strides = [1, 1]} : vector<8x32xf32> to vector<8x8xf32>
    %22 = vector.shape_cast %18 : vector<8x8xf32> to vector<1x8x8xf32>
    %23 = vector.shape_cast %19 : vector<8x8xf32> to vector<1x8x8xf32>
    %24 = vector.shape_cast %20 : vector<8x8xf32> to vector<1x8x8xf32>
    %25 = vector.shape_cast %21 : vector<8x8xf32> to vector<1x8x8xf32>
    %26 = tpu.concatenate %22, %23, %24, %25 in 0 : vector<1x8x8xf32>, vector<1x8x8xf32>, vector<1x8x8xf32>, vector<1x8x8xf32> -> vector<4x8x8xf32>
    %27 = vector.extract_strided_slice %17 {offsets = [0, 0], sizes = [8, 8], strides = [1, 1]} : vector<8x64xf32> to vector<8x8xf32>
    %28 = vector.extract_strided_slice %17 {offsets = [0, 8], sizes = [8, 8], strides = [1, 1]} : vector<8x64xf32> to vector<8x8xf32>
    %29 = vector.extract_strided_slice %17 {offsets = [0, 16], sizes = [8, 8], strides = [1, 1]} : vector<8x64xf32> to vector<8x8xf32>
    %30 = vector.extract_strided_slice %17 {offsets = [0, 24], sizes = [8, 8], strides = [1, 1]} : vector<8x64xf32> to vector<8x8xf32>
    %31 = vector.shape_cast %27 : vector<8x8xf32> to vector<1x8x8xf32>
    %32 = vector.shape_cast %28 : vector<8x8xf32> to vector<1x8x8xf32>
    %33 = vector.shape_cast %29 : vector<8x8xf32> to vector<1x8x8xf32>
    %34 = vector.shape_cast %30 : vector<8x8xf32> to vector<1x8x8xf32>
    %35 = tpu.concatenate %31, %32, %33, %34 in 0 : vector<1x8x8xf32>, vector<1x8x8xf32>, vector<1x8x8xf32>, vector<1x8x8xf32> -> vector<4x8x8xf32>
    %36 = vector.extract_strided_slice %17 {offsets = [0, 32], sizes = [8, 8], strides = [1, 1]} : vector<8x64xf32> to vector<8x8xf32>
    %37 = vector.extract_strided_slice %17 {offsets = [0, 40], sizes = [8, 8], strides = [1, 1]} : vector<8x64xf32> to vector<8x8xf32>
    %38 = vector.extract_strided_slice %17 {offsets = [0, 48], sizes = [8, 8], strides = [1, 1]} : vector<8x64xf32> to vector<8x8xf32>
    %39 = vector.extract_strided_slice %17 {offsets = [0, 56], sizes = [8, 8], strides = [1, 1]} : vector<8x64xf32> to vector<8x8xf32>
    %40 = vector.shape_cast %36 : vector<8x8xf32> to vector<1x8x8xf32>
    %41 = vector.shape_cast %37 : vector<8x8xf32> to vector<1x8x8xf32>
    %42 = vector.shape_cast %38 : vector<8x8xf32> to vector<1x8x8xf32>
    %43 = vector.shape_cast %39 : vector<8x8xf32> to vector<1x8x8xf32>
    %44 = tpu.concatenate %40, %41, %42, %43 in 0 : vector<1x8x8xf32>, vector<1x8x8xf32>, vector<1x8x8xf32>, vector<1x8x8xf32> -> vector<4x8x8xf32>
    %45 = arith.truncf %26 : vector<4x8x8xf32> to vector<4x8x8xbf16>
    %46 = arith.truncf %35 : vector<4x8x8xf32> to vector<4x8x8xbf16>
    "tpu.trace_start"() <{level = 10 : i32, message = "nqd,nkd->nqk"}> : () -> ()
    %cst_18 = arith.constant dense<0.000000e+00> : vector<4x8x8xf32>
    %47 = tpu.matmul %45, %46, %cst_18 {dimension_numbers = #tpu.dot_dimension_numbers<[2], [2], [1], [1], [0, 0, 0, 1, 1, 1], [0], [0]>} : vector<4x8x8xbf16>, vector<4x8x8xbf16>, vector<4x8x8xf32> -> vector<4x8x8xf32>
    "tpu.trace_stop"() : () -> ()
    %48 = vector.shape_cast %7 : vector<1x8xf32> to vector<1x1x8xf32>
    %49 = vector.broadcast %48 : vector<1x1x8xf32> to vector<4x8x8xf32>
    %50 = arith.addf %47, %49 : vector<4x8x8xf32>
    %cst_19 = arith.constant dense<0xFF800000> : vector<4x8xf32>
    %51 = vector.multi_reduction <maximumf>, %50, %cst_19 [2] : vector<4x8x8xf32> to vector<4x8xf32>
    %52 = vector.shape_cast %51 : vector<4x8xf32> to vector<4x8x1xf32>
    %53 = vector.broadcast %52 : vector<4x8x1xf32> to vector<4x8x8xf32>
    %54 = arith.subf %50, %53 : vector<4x8x8xf32>
    %55 = math.exp %54 : vector<4x8x8xf32>
    %cst_20 = arith.constant dense<0.000000e+00> : vector<4x8xf32>
    %56 = vector.multi_reduction <add>, %55, %cst_20 [2] : vector<4x8x8xf32> to vector<4x8xf32>
    %57 = vector.shape_cast %56 : vector<4x8xf32> to vector<4x8x1xf32>
    %58 = tpu.reciprocal %57 {approx = true} : vector<4x8x1xf32> -> vector<4x8x1xf32>
    %59 = vector.broadcast %58 : vector<4x8x1xf32> to vector<4x8x8xf32>
    %60 = arith.mulf %55, %59 : vector<4x8x8xf32>
    %61 = arith.truncf %60 : vector<4x8x8xf32> to vector<4x8x8xbf16>
    %62 = arith.truncf %44 : vector<4x8x8xf32> to vector<4x8x8xbf16>
    "tpu.trace_start"() <{level = 10 : i32, message = "nqk,nkd->nqd"}> : () -> ()
    %cst_21 = arith.constant dense<0.000000e+00> : vector<4x8x8xf32>
    %63 = tpu.matmul %61, %62, %cst_21 {dimension_numbers = #tpu.dot_dimension_numbers<[2], [1], [1], [2], [0, 0, 0, 1, 1, 2], [0], [0]>} : vector<4x8x8xbf16>, vector<4x8x8xbf16>, vector<4x8x8xf32> -> vector<4x8x8xf32>
    "tpu.trace_stop"() : () -> ()
    %64 = vector.extract_strided_slice %63 {offsets = [0, 0, 0], sizes = [1, 8, 8], strides = [1, 1, 1]} : vector<4x8x8xf32> to vector<1x8x8xf32>
    %65 = vector.shape_cast %64 : vector<1x8x8xf32> to vector<8x8xf32>
    %66 = vector.extract_strided_slice %63 {offsets = [1, 0, 0], sizes = [1, 8, 8], strides = [1, 1, 1]} : vector<4x8x8xf32> to vector<1x8x8xf32>
    %67 = vector.shape_cast %66 : vector<1x8x8xf32> to vector<8x8xf32>
    %68 = vector.extract_strided_slice %63 {offsets = [2, 0, 0], sizes = [1, 8, 8], strides = [1, 1, 1]} : vector<4x8x8xf32> to vector<1x8x8xf32>
    %69 = vector.shape_cast %68 : vector<1x8x8xf32> to vector<8x8xf32>
    %70 = vector.extract_strided_slice %63 {offsets = [3, 0, 0], sizes = [1, 8, 8], strides = [1, 1, 1]} : vector<4x8x8xf32> to vector<1x8x8xf32>
    %71 = vector.shape_cast %70 : vector<1x8x8xf32> to vector<8x8xf32>
    %72 = tpu.concatenate %65, %67, %69, %71 in 1 : vector<8x8xf32>, vector<8x8xf32>, vector<8x8xf32>, vector<8x8xf32> -> vector<8x32xf32>
    %73 = arith.truncf %72 : vector<8x32xf32> to vector<8x32xbf16>
    %c0_22 = arith.constant 0 : index
    %c0_23 = arith.constant 0 : index
    %74 = vector.load %arg9[%c0_22, %c0_23] : memref<32x32xbf16, #tpu.memory_space<vmem>>, vector<32x32xbf16>
    %cst_24 = arith.constant dense<0.000000e+00> : vector<8x32xf32>
    %75 = tpu.matmul %73, %74, %cst_24 {dimension_numbers = #tpu.dot_dimension_numbers<[1], [0], [0], [1], [0, 0, 1, 1], [], []>} : vector<8x32xbf16>, vector<32x32xbf16>, vector<8x32xf32> -> vector<8x32xf32>
    %c0_25 = arith.constant 0 : index
    %c0_26 = arith.constant 0 : index
    %76 = vector.load %arg10[%c0_25, %c0_26] : memref<1x32xf32, #tpu.memory_space<vmem>>, vector<1x32xf32>
    %77 = vector.broadcast %76 : vector<1x32xf32> to vector<8x32xf32>
    %78 = arith.addf %75, %77 : vector<8x32xf32>
    %79 = arith.addf %78, %1 : vector<8x32xf32>
    %c0_27 = arith.constant 0 : index
    %c0_28 = arith.constant 0 : index
    %80 = vector.load %arg11[%c0_27, %c0_28] : memref<1x32xf32, #tpu.memory_space<vmem>>, vector<1x32xf32>
    %c0_29 = arith.constant 0 : index
    %c0_30 = arith.constant 0 : index
    %81 = vector.load %arg12[%c0_29, %c0_30] : memref<1x32xf32, #tpu.memory_space<vmem>>, vector<1x32xf32>
    %cst_31 = arith.constant dense<0.000000e+00> : vector<8xf32>
    %82 = vector.multi_reduction <add>, %79, %cst_31 [1] : vector<8x32xf32> to vector<8xf32>
    %83 = vector.shape_cast %82 : vector<8xf32> to vector<8x1xf32>
    %cst_32 = arith.constant 3.200000e+01 : f32
    %84 = vector.broadcast %cst_32 : f32 to vector<8x1xf32>
    %85 = arith.divf %83, %84 : vector<8x1xf32>
    %86 = vector.broadcast %85 : vector<8x1xf32> to vector<8x32xf32>
    %87 = arith.subf %79, %86 : vector<8x32xf32>
    %88 = arith.mulf %87, %87 : vector<8x32xf32>
    %cst_33 = arith.constant dense<0.000000e+00> : vector<8xf32>
    %89 = vector.multi_reduction <add>, %88, %cst_33 [1] : vector<8x32xf32> to vector<8xf32>
    %90 = vector.shape_cast %89 : vector<8xf32> to vector<8x1xf32>
    %cst_34 = arith.constant 3.200000e+01 : f32
    %91 = vector.broadcast %cst_34 : f32 to vector<8x1xf32>
    %92 = arith.divf %90, %91 : vector<8x1xf32>
    %93 = vector.broadcast %85 : vector<8x1xf32> to vector<8x32xf32>
    %94 = arith.subf %79, %93 : vector<8x32xf32>
    %cst_35 = arith.constant 9.99999996E-13 : f32
    %95 = vector.broadcast %cst_35 : f32 to vector<8x1xf32>
    %96 = arith.addf %92, %95 : vector<8x1xf32>
    %97 = math.sqrt %96 : vector<8x1xf32>
    %98 = vector.broadcast %97 : vector<8x1xf32> to vector<8x32xf32>
    %99 = arith.divf %94, %98 : vector<8x32xf32>
    %100 = vector.broadcast %80 : vector<1x32xf32> to vector<8x32xf32>
    %101 = arith.mulf %99, %100 : vector<8x32xf32>
    %102 = vector.broadcast %81 : vector<1x32xf32> to vector<8x32xf32>
    %103 = arith.addf %101, %102 : vector<8x32xf32>
    %104 = arith.truncf %103 : vector<8x32xf32> to vector<8x32xbf16>
    %c0_36 = arith.constant 0 : index
    %c0_37 = arith.constant 0 : index
    %105 = vector.load %arg13[%c0_36, %c0_37] : memref<32x64xbf16, #tpu.memory_space<vmem>>, vector<32x64xbf16>
    %cst_38 = arith.constant dense<0.000000e+00> : vector<8x64xf32>
    %106 = tpu.matmul %104, %105, %cst_38 {dimension_numbers = #tpu.dot_dimension_numbers<[1], [0], [0], [1], [0, 0, 1, 1], [], []>} : vector<8x32xbf16>, vector<32x64xbf16>, vector<8x64xf32> -> vector<8x64xf32>
    %c0_39 = arith.constant 0 : index
    %c0_40 = arith.constant 0 : index
    %107 = vector.load %arg14[%c0_39, %c0_40] : memref<1x64xf32, #tpu.memory_space<vmem>>, vector<1x64xf32>
    %108 = vector.broadcast %107 : vector<1x64xf32> to vector<8x64xf32>
    %109 = arith.addf %106, %108 : vector<8x64xf32>
    %cst_41 = arith.constant 5.000000e-01 : f32
    %110 = vector.broadcast %cst_41 : f32 to vector<8x64xf32>
    %111 = arith.mulf %109, %110 : vector<8x64xf32>
    %cst_42 = arith.constant 2.000000e+00 : f32
    %112 = math.sqrt %cst_42 : f32
    %113 = vector.broadcast %112 : f32 to vector<8x64xf32>
    %114 = arith.divf %109, %113 : vector<8x64xf32>
    %115 = math.erf %114 : vector<8x64xf32>
    %cst_43 = arith.constant 1.000000e+00 : f32
    %116 = vector.broadcast %cst_43 : f32 to vector<8x64xf32>
    %117 = arith.addf %116, %115 : vector<8x64xf32>
    %118 = arith.mulf %111, %117 : vector<8x64xf32>
    %119 = arith.truncf %118 : vector<8x64xf32> to vector<8x64xbf16>
    %c0_44 = arith.constant 0 : index
    %c0_45 = arith.constant 0 : index
    %120 = vector.load %arg15[%c0_44, %c0_45] : memref<64x32xbf16, #tpu.memory_space<vmem>>, vector<64x32xbf16>
    %cst_46 = arith.constant dense<0.000000e+00> : vector<8x32xf32>
    %121 = tpu.matmul %119, %120, %cst_46 {dimension_numbers = #tpu.dot_dimension_numbers<[1], [0], [0], [1], [0, 0, 1, 1], [], []>} : vector<8x64xbf16>, vector<64x32xbf16>, vector<8x32xf32> -> vector<8x32xf32>
    %c0_47 = arith.constant 0 : index
    %c0_48 = arith.constant 0 : index
    %122 = vector.load %arg16[%c0_47, %c0_48] : memref<1x32xf32, #tpu.memory_space<vmem>>, vector<1x32xf32>
    %123 = vector.broadcast %122 : vector<1x32xf32> to vector<8x32xf32>
    %124 = arith.addf %121, %123 : vector<8x32xf32>
    %125 = arith.addf %124, %103 : vector<8x32xf32>
    %c0_49 = arith.constant 0 : index
    %c0_50 = arith.constant 0 : index
    %126 = vector.load %arg17[%c0_49, %c0_50] : memref<1x32xf32, #tpu.memory_space<vmem>>, vector<1x32xf32>
    %c0_51 = arith.constant 0 : index
    %c0_52 = arith.constant 0 : index
    %127 = vector.load %arg18[%c0_51, %c0_52] : memref<1x32xf32, #tpu.memory_space<vmem>>, vector<1x32xf32>
    %cst_53 = arith.constant dense<0.000000e+00> : vector<8xf32>
    %128 = vector.multi_reduction <add>, %125, %cst_53 [1] : vector<8x32xf32> to vector<8xf32>
    %129 = vector.shape_cast %128 : vector<8xf32> to vector<8x1xf32>
    %cst_54 = arith.constant 3.200000e+01 : f32
    %130 = vector.broadcast %cst_54 : f32 to vector<8x1xf32>
    %131 = arith.divf %129, %130 : vector<8x1xf32>
    %132 = vector.broadcast %131 : vector<8x1xf32> to vector<8x32xf32>
    %133 = arith.subf %125, %132 : vector<8x32xf32>
    %134 = arith.mulf %133, %133 : vector<8x32xf32>
    %cst_55 = arith.constant dense<0.000000e+00> : vector<8xf32>
    %135 = vector.multi_reduction <add>, %134, %cst_55 [1] : vector<8x32xf32> to vector<8xf32>
    %136 = vector.shape_cast %135 : vector<8xf32> to vector<8x1xf32>
    %cst_56 = arith.constant 3.200000e+01 : f32
    %137 = vector.broadcast %cst_56 : f32 to vector<8x1xf32>
    %138 = arith.divf %136, %137 : vector<8x1xf32>
    %139 = vector.broadcast %131 : vector<8x1xf32> to vector<8x32xf32>
    %140 = arith.subf %125, %139 : vector<8x32xf32>
    %cst_57 = arith.constant 9.99999996E-13 : f32
    %141 = vector.broadcast %cst_57 : f32 to vector<8x1xf32>
    %142 = arith.addf %138, %141 : vector<8x1xf32>
    %143 = math.sqrt %142 : vector<8x1xf32>
    %144 = vector.broadcast %143 : vector<8x1xf32> to vector<8x32xf32>
    %145 = arith.divf %140, %144 : vector<8x32xf32>
    %146 = vector.broadcast %126 : vector<1x32xf32> to vector<8x32xf32>
    %147 = arith.mulf %145, %146 : vector<8x32xf32>
    %148 = vector.broadcast %127 : vector<1x32xf32> to vector<8x32xf32>
    %149 = arith.addf %147, %148 : vector<8x32xf32>
    %150 = arith.truncf %149 : vector<8x32xf32> to vector<8x32xbf16>
    %c0_58 = arith.constant 0 : index
    %c0_59 = arith.constant 0 : index
    %c0_60 = arith.constant 0 : index
    %151 = vector.load %arg19[%c0_58, %c0_59, %c0_60] : memref<1x8x32xbf16, #tpu.memory_space<vmem>>, vector<1x8x32xbf16>
    %152 = vector.shape_cast %151 : vector<1x8x32xbf16> to vector<8x32xbf16>
    %153 = vector.shape_cast %150 : vector<8x32xbf16> to vector<1x8x32xbf16>
    tpu.vector_store %arg19[%c0_58, %c0_59, %c0_60], %153 {strides = array<i32>} : memref<1x8x32xbf16, #tpu.memory_space<vmem>>, vector<1x8x32xbf16>,
    return
  }
  func.func @transform_0(%arg0: i32, %arg1: i32) -> (i32, i32, i32) {
    %c0_i32 = arith.constant 0 : i32
    %c0_i32_0 = arith.constant 0 : i32
    return %arg0, %arg1, %c0_i32 : i32, i32, i32
  }
  func.func @transform_1(%arg0: i32, %arg1: i32) -> (i32, i32, i32) {
    %c0_i32 = arith.constant 0 : i32
    %c0_i32_0 = arith.constant 0 : i32
    %c0_i32_1 = arith.constant 0 : i32
    return %arg0, %c0_i32, %c0_i32_0 : i32, i32, i32
  }
  func.func @transform_2(%arg0: i32, %arg1: i32) -> (i32, i32, i32, i32) {
    %c0_i32 = arith.constant 0 : i32
    %c0_i32_0 = arith.constant 0 : i32
    %c0_i32_1 = arith.constant 0 : i32
    %c0_i32_2 = arith.constant 0 : i32
    return %arg0, %c0_i32, %c0_i32_0, %c0_i32_1 : i32, i32, i32, i32
  }
  func.func @transform_3(%arg0: i32, %arg1: i32) -> (i32, i32) {
    %c0_i32 = arith.constant 0 : i32
    %c0_i32_0 = arith.constant 0 : i32
    %c0_i32_1 = arith.constant 0 : i32
    return %c0_i32, %c0_i32_0 : i32, i32
  }
  func.func @transform_4(%arg0: i32, %arg1: i32) -> (i32, i32) {
    %c0_i32 = arith.constant 0 : i32
    %c0_i32_0 = arith.constant 0 : i32
    %c0_i32_1 = arith.constant 0 : i32
    return %c0_i32, %c0_i32_0 : i32, i32
  }
  func.func @transform_5(%arg0: i32, %arg1: i32) -> (i32, i32) {
    %c0_i32 = arith.constant 0 : i32
    %c0_i32_0 = arith.constant 0 : i32
    %c0_i32_1 = arith.constant 0 : i32
    return %c0_i32, %c0_i32_0 : i32, i32
  }
  func.func @transform_6(%arg0: i32, %arg1: i32) -> (i32, i32) {
    %c0_i32 = arith.constant 0 : i32
    %c0_i32_0 = arith.constant 0 : i32
    %c0_i32_1 = arith.constant 0 : i32
    return %c0_i32, %c0_i32_0 : i32, i32
  }
  func.func @transform_7(%arg0: i32, %arg1: i32) -> (i32, i32) {
    %c0_i32 = arith.constant 0 : i32
    %c0_i32_0 = arith.constant 0 : i32
    %c0_i32_1 = arith.constant 0 : i32
    return %c0_i32, %c0_i32_0 : i32, i32
  }
  func.func @transform_8(%arg0: i32, %arg1: i32) -> (i32, i32) {
    %c0_i32 = arith.constant 0 : i32
    %c0_i32_0 = arith.constant 0 : i32
    %c0_i32_1 = arith.constant 0 : i32
    return %c0_i32, %c0_i32_0 : i32, i32
  }
  func.func @transform_9(%arg0: i32, %arg1: i32) -> (i32, i32) {
    %c0_i32 = arith.constant 0 : i32
    %c0_i32_0 = arith.constant 0 : i32
    %c0_i32_1 = arith.constant 0 : i32
    return %c0_i32, %c0_i32_0 : i32, i32
  }
  func.func @transform_10(%arg0: i32, %arg1: i32) -> (i32, i32) {
    %c0_i32 = arith.constant 0 : i32
    %c0_i32_0 = arith.constant 0 : i32
    %c0_i32_1 = arith.constant 0 : i32
    return %c0_i32, %c0_i32_0 : i32, i32
  }
  func.func @transform_11(%arg0: i32, %arg1: i32) -> (i32, i32) {
    %c0_i32 = arith.constant 0 : i32
    %c0_i32_0 = arith.constant 0 : i32
    %c0_i32_1 = arith.constant 0 : i32
    return %c0_i32, %c0_i32_0 : i32, i32
  }
  func.func @transform_12(%arg0: i32, %arg1: i32) -> (i32, i32) {
    %c0_i32 = arith.constant 0 : i32
    %c0_i32_0 = arith.constant 0 : i32
    %c0_i32_1 = arith.constant 0 : i32
    return %c0_i32, %c0_i32_0 : i32, i32
  }
  func.func @transform_13(%arg0: i32, %arg1: i32) -> (i32, i32) {
    %c0_i32 = arith.constant 0 : i32
    %c0_i32_0 = arith.constant 0 : i32
    %c0_i32_1 = arith.constant 0 : i32
    return %c0_i32, %c0_i32_0 : i32, i32
  }
  func.func @transform_14(%arg0: i32, %arg1: i32) -> (i32, i32) {
    %c0_i32 = arith.constant 0 : i32
    %c0_i32_0 = arith.constant 0 : i32
    %c0_i32_1 = arith.constant 0 : i32
    return %c0_i32, %c0_i32_0 : i32, i32
  }
  func.func @transform_15(%arg0: i32, %arg1: i32) -> (i32, i32) {
    %c0_i32 = arith.constant 0 : i32
    %c0_i32_0 = arith.constant 0 : i32
    %c0_i32_1 = arith.constant 0 : i32
    return %c0_i32, %c0_i32_0 : i32, i32
  }
  func.func @transform_16(%arg0: i32, %arg1: i32) -> (i32, i32) {
    %c0_i32 = arith.constant 0 : i32
    %c0_i32_0 = arith.constant 0 : i32
    %c0_i32_1 = arith.constant 0 : i32
    return %c0_i32, %c0_i32_0 : i32, i32
  }
  func.func @transform_17(%arg0: i32, %arg1: i32) -> (i32, i32, i32) {
    %c0_i32 = arith.constant 0 : i32
    %c0_i32_0 = arith.constant 0 : i32
    return %arg0, %arg1, %c0_i32 : i32, i32, i32
  }
}

</mosaic_0001>

<bundles_post_ra>
// kernel: tpu_custom_call.1
= control target key start
LH: loop header
LB: loop body
LE: loop exit
PB: predicated region body
PF: predicated region fallthrough
CT: control target
= control target key end

     0   :  { %s2291_s0 = inlined_call_operand.vmem [shape: f32[2,8,32], index: 0, kind: input, shape index: {}]   ;;  %s2292_s1 = inlined_call_operand.vmem [shape: f32[2,8,32], index: 1, kind: input, shape index: {}]   ;;  %s2293_s2 = inlined_call_operand.hbm [shape: f32[2,1,1,8], index: 2, kind: input, shape index: {}]   ;;  %s2294_s3 = inlined_call_operand.vmem [shape: bf16[32,32], index: 3, kind: input, shape index: {}]   ;;  %s2295_s4 = inlined_call_operand.vmem [shape: f32[1,32], index: 4, kind: input, shape index: {}]   ;;  %s2296_s5 = inlined_call_operand.hbm [shape: bf16[32,64], index: 5, kind: input, shape index: {}]   ;;  %s2297_s6 = inlined_call_operand.vmem [shape: f32[1,64], index: 6, kind: input, shape index: {}]   ;;  %s2298_s7 = inlined_call_operand.hbm [shape: bf16[32,32], index: 7, kind: input, shape index: {}]   ;;  %s2299_s8 = inlined_call_operand.vmem [shape: f32[1,32], index: 8, kind: input, shape index: {}]   ;;  %s2300_s9 = inlined_call_operand.vmem [shape: f32[1,32], index: 9, kind: input, shape index: {}]   ;;  %s2301_s10 = inlined_call_operand.vmem [shape: f32[1,32], index: 10, kind: input, shape index: {}]   ;;  %s2302_s11 = inlined_call_operand.hbm [shape: bf16[32,64], index: 11, kind: input, shape index: {}]   ;;  %s2303_s12 = inlined_call_operand.vmem [shape: f32[1,64], index: 12, kind: input, shape index: {}]   ;;  %s2304_s13 = inlined_call_operand.vmem [shape: bf16[64,32], index: 13, kind: input, shape index: {}]   ;;  %s2305_s14 = inlined_call_operand.vmem [shape: f32[1,32], index: 14, kind: input, shape index: {}]   ;;  %s2306_s15 = inlined_call_operand.vmem [shape: f32[1,32], index: 15, kind: input, shape index: {}]   ;;  %s2307_s16 = inlined_call_operand.vmem [shape: f32[1,32], index: 16, kind: input, shape index: {}]   ;;  %s2308_s17 = inlined_call_operand.hbm [shape: bf16[2,8,32], index: 17, kind: output, shape index: {}]  }
   0x1   :  { %2313 = sst [smem:[#allocation17_spill]] %s2291_s0 }
   0x2   :  { %2314 = sst [smem:[#allocation18_spill]] %s2292_s1 }
   0x3   :  { %2315 = sst [smem:[#allocation19_spill]] %s2293_s2 }
   0x4   :  { %2316 = sst [smem:[#allocation20_spill]] %s2296_s5 }
   0x5   :  { %2317 = sst [smem:[#allocation21_spill]] %s2298_s7 }
   0x6   :  { %2318 = sst [smem:[#allocation22_spill]] %s2302_s11 }
   0x7   :  { %2319 = sst [smem:[#allocation23_spill]] %s2305_s14 }
   0x8   :  { %2320 = sst [smem:[#allocation24_spill]] %s2306_s15 }
   0x9   :  { %2321 = sst [smem:[#allocation25_spill]] %s2307_s16 }
   0xa   :  { %2322 = sst [smem:[#allocation26_spill]] %s2308_s17 }
   0xb   :  { %22 = vsyncpa [#allocation3], 0 }
   0xc   :  { %24 = vsyncpa [#allocation3 + $0x1], 0 }
   0xd   :  { %25 = vsyncpa [#allocation6], 0 }
   0xe   :  { %26 = vsyncpa [#allocation9], 0 }
   0xf   :  { %27 = vsyncpa [#allocation4], 0 }
  0x10   :  { %29 = vsyncpa [#allocation4 + $0x1], 0  ;;  %s2007_s24 = smov 0   ;;  %s2009_s25 = smov 0  }
  0x11   :  { %s2011_s26 = smov 0   ;;  %s2013_s27 = smov 0  }
  0x12   :  { %s2015_s28 = smov 0   ;;  %s2017_s29 = smov 0  }
  0x13 LB: > { %2323 = sst [smem:[#allocation15_spill]] %s1897_s28  ;;  %s2309_s0 = sadd.s32 4294967295, %s1901_s29   ;;  %s1901_s29 = sphi %s2017_s29, %s35_s29   ;;  %s1897_s28 = sphi %s2015_s28, %s2345_s28   ;;  %s1893_s27 = sphi %s2013_s27, %s2344_s27   ;;  %s1889_s26 = sphi %s2011_s26, %s2348_s26   ;;  %s1885_s25 = sphi %s2009_s25, %s2347_s25   ;;  %s1881_s24 = sphi %s2007_s24, %s2346_s24  }
  0x14   : > { %p1457_p0 = scmp.ge.s32.totalorder %s1901_s29, 1  ;;  %p2041_p1 = scmp.eq.s32.totalorder %s2309_s0, 0 }
  0x15   : > { %p454_p2 = scmp.lt.s32.totalorder %s1901_s29, 3  ;;  %s2325_s5 = sld [smem:[#allocation20_spill]] }
  0x16   : > { %s1903_s21 = smov [#allocation5]   ;;  %p1461_p6 = scmp.ge.s32.totalorder %s1901_s29, 2 }
  0x17   : > { %p2049_p3 = pnand %p1457_p0, %p454_p2  ;;  %s473_s22 = sshll.u32 %s1903_s21, 4  ;;  %s474_s22 = int_to_ptr.vmem [resolvable:$true] %s473_s22 }
  0x18   : > { %s2328_s7 = sld [smem:[#allocation21_spill]]  ;;  %s1905_s21 = smov 4  }
  0x19   : > { %p1563_p4 = pneg %p2049_p3  ;;  %s1906_s17 = smov [#allocation7]  }
  0x1a   : > { %s490_s16 = sshll.u32 %s1906_s17, 4  ;;  %s2329_s11 = sld [smem:[#allocation22_spill]]  ;;  %s491_s16 = int_to_ptr.vmem [resolvable:$true] %s490_s16 }
  0x1b   : > { %s471_s1 = sshll.u32 %s2325_s5, 4  ;;  %p2057_p5 = pnand %p1563_p4, %p2041_p1  ;;  %s472_s1 = int_to_ptr.hbm [resolvable:$true] %s471_s1 }
  0x1c   : > { %s1904_s5 = smov 64   ;;  %s1907_s19 = smov [#allocation8]  }
  0x1d   : > { %1566 = dma.hbm_to_vmem [thread:$0]  (!%p2057_p5), %s472_s1, 256, %s474_s22, [#allocation6], %s1904_s5, %s1904_s5, %s1905_s21  }
  0x1e   : > { %s488_s0 = sshll.u32 %s2328_s7, 4  ;;  %s513_s7 = sshll.u32 %s1907_s19, 4  ;;  %s489_s0 = int_to_ptr.hbm [resolvable:$true] %s488_s0  ;;  %s514_s7 = int_to_ptr.vmem [resolvable:$true] %s513_s7 }
  0x1f   : > { %1569 = dma.hbm_to_vmem [thread:$0]  (!%p2057_p5), %s489_s0, 256, %s491_s16, [#allocation6], %s1904_s5, %s1904_s5, %s1905_s21  }
  0x20   : > { %s511_s18 = sshll.u32 %s2329_s11, 4  ;;  %s1456_s1 = sadd.s32 4294967294, %s1901_s29   ;;  %s512_s18 = int_to_ptr.hbm [resolvable:$true] %s511_s18 }
  0x21   : > { %1572 = dma.hbm_to_vmem [thread:$0]  (!%p2057_p5), %s512_s18, 256, %s514_s7, [#allocation9], %s1904_s5, %s1904_s5, %s1905_s21  }
  0x22   : > { %s47_s17 = sadd.s32 1, %s1897_s28  ;;  %s108_s22 = sadd.s32 1, %s1889_s26 }
  0x23   : > { %p49_p7 = scmp.ge.s32.totalorder %s47_s17, 2  ;;  %p115_p8 = scmp.ne.s32.totalorder %s1889_s26, %s1885_s25 }
  0x24   : > { %p116_p9 = scmp.eq.s32.totalorder %s1901_s29, 0  ;;  %p121_p10 = scmp.ne.s32.totalorder %s1885_s25, %s1881_s24 }
  0x25   : > { %s2350_s17 = smov (%p49_p7, %s47_s17), 0  ;;  %s2333_s15 = sadd.s32 4294967295, %s1901_s29  }
  0x26   : > { %2330 = sst [smem:[#allocation16_spill]] %s2350_s17  ;;  %p2084_p11 = por %p116_p9, %p115_p8 }
  0x27   : > { %p2090_p12 = por %p2041_p1, %p121_p10  ;;  %s105_s7 = ssub.s32 %s1897_s28, %s2350_s17 }
  0x28   : > { %p441_p13 = scmp.eq.s32.totalorder %s2333_s15, 1  ;;  %p106_p0 = scmp.eq.s32.totalorder %s105_s7, 0 }
  0x29   : > { %p447_p2 = scmp.eq.s32.totalorder %s1456_s1, 1  ;;  %p1584_p5 = scmp.lt.s32.totalorder %s1901_s29, 2 }
  0x2a   : > { %p2098_p4 = por %p441_p13, %p115_p8  ;;  %s559_s21 = sand.u32 1, %s1889_s26  }
  0x2b   : > { %s2104_s0 = scalar_select %p106_p0, %s1889_s26, %s108_s22  }
  0x2c   : > { %p2106_p7 = por %p447_p2, %p121_p10  ;;  %s2336_s2 = sld [smem:[#allocation19_spill]] }
  0x2d   : > { %s562_s17 = scalar_lea.vmem [#allocation2], %s559_s21  ;;  %p1574_p8 = pnand %p1584_p5, %p2084_p11 }
  0x2e   : > { %s569_s15 = sshll.u32 %s562_s17, 4  ;;  %s560_s1 = scalar_lea.sflag [#allocation3], %s559_s21  ;;  %s570_s15 = int_to_ptr.vmem [resolvable:$true] %s569_s15 }
  0x2f   : > { %s2120_s22 = sand.u32 (!%p2049_p3), 1, %s1885_s25  }
  0x30   : > { %578 = sbr.rel (%p2049_p3) target bundleno = 2003 (0x7d3), region = 88  ;;  %s581_s18 = scalar_lea.sflag (!%p2049_p3), [#allocation3], %s2120_s22 }
  0x32   : > { %s565_s11 = scalar_lea.hbm %s2336_s2, %s1897_s28 }
  0x33   : > { %s567_s7 = sshll.u32 %s565_s11, 4  ;;  %s568_s7 = int_to_ptr.hbm [resolvable:$true] %s567_s7 }
  0x34   : > { %1576 = dma.hbm_to_vmem [thread:$0]  (!%p1574_p8), %s568_s7, 16, %s570_s15, %s560_s1  }
  0x35   : > { %1864 = dma.done.wait (%p2090_p12), %s581_s18, 16  }
  0x36   : > { %1866 = vsyncadd (%p2090_p12), %s581_s18, 4294967280 }
  0x37   : > { %1868 = dma.done.wait (%p2041_p1), [#allocation6], 512  }
  0x38   : > { %1870 = vsyncadd (%p2041_p1), [#allocation6], 4294966784 }
  0x39   : > { %1872 = dma.done.wait (%p2041_p1), [#allocation9], 256  }
  0x3a   : > { %1874 = vsyncadd (%p2041_p1), [#allocation9], 4294967040  ;;  %p660_p3 = scmp.lt.s32.totalorder %s1893_s27, 1  ;;  %s2337_s5 = sld [smem:[#allocation18_spill]]  ;;  %v1538_v0 = vld [vmem:[#allocation5 + $0x8] sm:$0xff]  ;;  %v1537_v1 = vld [vmem:[#allocation5] sm:$0xff] }
  0x3b   : > { %s2338_s1 = sld [smem:[#allocation17_spill]]  ;;  %v1536_v3 = vld [vmem:[%s2294_s3 + $0x8] sm:$0xff]  ;;  %v1535_v4 = vld [vmem:[%s2294_s3] sm:$0xff]  ;;  %743 = vmatpush.bf16.msra.mxu1 %v1538_v0  ;;  %vm697_vm0 = vcmask 261120   ;;  %vm781_vm1 = vcmask 64512   ;;  %s1909_s17 = smov 120  }
  0x3c   : > { %s661_s11 = scalar_select %p660_p3, %s1893_s27, 1  ;;  %707 = vmatpush.bf16.msra.mxu0 %v1536_v3  ;;  %v1651_v8 = vld [vmem:[%s2297_s6] ss:$0 sm:$0xff]  ;;  %vm914_vm2 = vcmask 1043456   ;;  %vm1016_vm3 = vcmask 130048   ;;  %vm1018_vm4 = vcmask 195584  }
  0x3d   : > { %v1652_v9 = vld [vmem:[%s2295_s4] ss:$0 sm:$0xff]  ;;  %s1910_s14 = smov 104   ;;  %s1912_s15 = smov 16  }
  0x3e   : > { %s1467_s20 = sshll.u32 %s661_s11, 3  ;;  %s1913_s7 = smov 8  }
  0x3f   : > { %744 = vmatpush.bf16.msra.mxu1 %v1537_v1  ;;  %s2340_s28 = sld [smem:[#allocation23_spill]]  ;;  %s1466_s11 = sshll.u32 %s2120_s22, 2 }
  0x40   : > { %s670_s21 = scalar_lea.vmem %s2337_s5, %s1467_s20  ;;  %708 = vmatpush.bf16.msra.mxu0 %v1535_v4  ;;  %s2339_s5 = scalar_lea.vmem [#allocation2], %s2120_s22 }
  0x41   : > { %s666_s18 = scalar_lea.vmem %s2338_s1, %s1467_s20  ;;  %v674_v2 = vld [vmem:[%s670_s21] sm:$0xff]  ;;  %s1908_s20 = smov 112  }
  0x42   : > { %v2150_v5 = vld [vmem:[%s666_s18] sm:$0xff]  ;;  %v675_v6 = vpack.c.bf16 %v674_v2, %v674_v2  ;;  %s1911_s21 = smov 96   ;;  %s1914_s1 = smov 24  }
  0x43   : > { %v673_v7 = vpack.c.bf16 %v2150_v5, %v2150_v5  ;;  %v1653_v36 = vld [vmem:[%s2339_s5] ss:$0 sm:$0xff]  ;;  %s2341_s5 = sld [smem:[#allocation24_spill]] }
  0x44   : > { %1486 = vmatmul.msk.bf16.vlgmr.msra.gmra.mxu1 %vm697_vm0, %v675_v6  ;;  %s2343_s30 = sld [smem:[#allocation26_spill]] }
  0x45   : > { %1477 = vmatmul.msk.bf16.vlgmr.msra.gmra.mxu0 %vm697_vm0, %v673_v7 }
  0xc1   : > { %v746_v10 = vpop.f32.mrf.mxu1 }
  0xc2   : > { %v747_v11 = vadd.f32 %v1651_v8, %v746_v10  ;;  %v710_v12 = vpop.f32.mrf.mxu0 }
  0xc3   : > { %v711_v13 = vadd.f32 %v1652_v9, %v710_v12 }
  0xc4   : > { %764 = vrot.lane.b32.xlu1 %v747_v11, %s1908_s20  ;;  %761 = vrot.lane.b32.xlu0 %v747_v11, %s1909_s17  ;;  %v2162_v14 = vpack.c.bf16 %v747_v11, %v747_v11 }
  0xc5   : > { %754 = vrot.lane.b32.xlu2 %v711_v13, %s1908_s20  ;;  %v770_v17 = vpack.c.bf16 %v711_v13, %v711_v13  ;;  %s1532_s20 = sshll.u32 %s1893_s27, 2  ;;  %s659_s27 = scalar_lea.vmem [#allocation10], %s1466_s11 }
  0xc6   : > { %v786_v15 = vsel %vm781_vm1, %v2162_v14, 0  ;;  %v907_v8 = vunpack.c.l.b16 %v2162_v14  ;;  %s1319_s2 = scalar_lea.hbm %s2343_s30, %s1532_s20  ;;  %s1321_s19 = sshll.u32 %s659_s27, 4  ;;  %s1322_s19 = int_to_ptr.vmem [resolvable:$true] %s1321_s19 }
  0xc7   : > { %795 = vmatpush.bf16.xpose.msra.mxu2 %v786_v15  ;;  %s1831_s11 = scalar_lea.hbm %s2343_s30, 8 }
  0xc8   : > { %v908_v10 = vpack.c.b16 %v907_v8, %v907_v8 }
  0xc9   : > { %v748_v16 = vpop.f32.mrf.mxu1 }
  0xca   : > { %v712_v18 = vpop.f32.mrf.mxu0 }
  0xcc   : > { %767 = vrot.lane.b32.xlu1 %v747_v11, %s1910_s14  ;;  %751 = vrot.lane.b32.xlu0 %v711_v13, %s1909_s17  ;;  %s1308_s17 = scalar_lea.sflag [#allocation4], %s2120_s22 }
  0xcd   : > { %757 = vrot.lane.b32.xlu2 %v711_v13, %s1910_s14 }
  0xce   : > { %1487 = vmatmul.msk.bf16.vlgmr.msra.gmra.mxu2 %vm781_vm1, %v770_v17 }
 0x11f   : > { %v755_v25 = vpop.permute.xlu2 %754 }
 0x120   : > { %v772_v28 = vpack.c.bf16 %v755_v25, %v755_v25 }
 0x127   : > { %v758_v32 = vpop.permute.xlu2 %757 }
 0x128   : > { %v773_v33 = vpack.c.bf16 %v758_v32, %v758_v32 }
 0x136   : > { %v765_v19 = vpop.permute.xlu1 %764  ;;  %v762_v20 = vpop.permute.xlu0 %761 }
 0x137   : > { %v2167_v21 = vpack.c.bf16 %v765_v19, %v765_v19  ;;  %v2169_v22 = vpack.c.bf16 %v762_v20, %v762_v20 }
 0x139   : > { %v805_v23 = vsel %vm781_vm1, %v2169_v22, 0  ;;  %v824_v24 = vsel %vm781_vm1, %v2167_v21, 0  ;;  %v956_v2 = vunpack.c.l.b16 %v2167_v21  ;;  %v932_v3 = vunpack.c.l.b16 %v2169_v22 }
 0x13a   : > { %814 = vmatpush.bf16.xpose.msra.mxu3 %v805_v23  ;;  %833 = vmatpush.bf16.xpose.msrb.mxu0 %v824_v24 }
 0x13b   : > { %v957_v4 = vpack.c.b16 %v956_v2, %v956_v2  ;;  %v933_v6 = vpack.c.b16 %v932_v3, %v932_v3 }
 0x13e   : > { %v768_v26 = vpop.permute.xlu1 %767  ;;  %v752_v27 = vpop.permute.xlu0 %751 }
 0x13f   : > { %v777_v29 = vpack.c.bf16 %v768_v26, %v768_v26  ;;  %v771_v30 = vpack.c.bf16 %v752_v27, %v752_v27 }
 0x141   : > { %1488 = vmatmul.msk.bf16.vlgmr.msra.gmra.mxu3 %vm781_vm1, %v771_v30  ;;  %1489 = vmatmul.msk.bf16.vlgmr.msrb.gmra.mxu0 %vm781_vm1, %v772_v28  ;;  %v843_v31 = vsel %vm781_vm1, %v777_v29, 0  ;;  %v980_v7 = vunpack.c.l.b16 %v777_v29 }
 0x142   : > { %852 = vmatpush.bf16.xpose.msrb.mxu1 %v843_v31 }
 0x143   : > { %v981_v9 = vpack.c.b16 %v980_v7, %v980_v7 }
 0x149   : > { %1490 = vmatmul.msk.bf16.vlgmr.msrb.gmra.mxu1 %vm781_vm1, %v773_v33 }
 0x151   : > { %v797_v34 = vpop.f32.mrf.mxu2 }
 0x152   : > { %v798_v48 = vadd.f32 %v1653_v36, %v797_v34 }
 0x154   : > { %v858_v50 = vsel %vm781_vm1, %v798_v48, -inf }
 0x159   : > { %v799_v35 = vpop.f32.mrf.mxu2 }
 0x1be   : > { %v835_v37 = vpop.f32.mrf.mxu0 }
 0x1bf   : > { %v836_v38 = vadd.f32 %v1653_v36, %v835_v37 }
 0x1c1   : > { %v864_v39 = vsel %vm781_vm1, %v836_v38, -inf }
 0x1c2   : > { %865 = vmax.xlane.f32.xlu1 %v864_v39 }
 0x1c4   : > { %v816_v40 = vpop.f32.mrf.mxu3 }
 0x1c5   : > { %v817_v41 = vadd.f32 %v1653_v36, %v816_v40 }
 0x1c6   : > { %v837_v42 = vpop.f32.mrf.mxu0  ;;  %v854_v43 = vpop.f32.mrf.mxu1 }
 0x1c7   : > { %v855_v44 = vadd.f32 %v1653_v36, %v854_v43  ;;  %v861_v45 = vsel %vm781_vm1, %v817_v41, -inf }
 0x1c8   : > { %862 = vmax.xlane.f32.xlu0 %v861_v45 }
 0x1c9   : > { %v867_v46 = vsel %vm781_vm1, %v855_v44, -inf }
 0x1ca   : > { %868 = vmax.xlane.f32.xlu2 %v867_v46 }
 0x1cc   : > { %v818_v47 = vpop.f32.mrf.mxu3 }
 0x1ce   : > { %v856_v49 = vpop.f32.mrf.mxu1 }
 0x1cf   : > { %v1539_v49 = vld [vmem:[#allocation7] sm:$0xff] }
 0x1d2   : > { %859 = vmax.xlane.f32.xlu2 %v858_v50 }
 0x235   : > { %v866_v51 = vpop.xlane.xlu1 %865 }
 0x236   : > { %v872_v52 = vsub.f32 %v836_v38, %v866_v51 }
 0x238   : > { %v878_v53 = vmul.f32 1.442695, %v872_v52 }
 0x23a   : > { %1661 = vpow2.f32 %v878_v53 }
 0x23b   : > { %v863_v54 = vpop.xlane.xlu0 %862 }
 0x23c   : > { %v871_v55 = vsub.f32 %v817_v41, %v863_v54 }
 0x23d   : > { %v869_v56 = vpop.xlane.xlu2 %868 }
 0x23e   : > { %v876_v57 = vmul.f32 1.442695, %v871_v55  ;;  %v873_v58 = vsub.f32 %v855_v44, %v869_v56 }
 0x240   : > { %v1662_v59 = vpop.eup %1661  ;;  %1663 = vpow2.f32 %v876_v57  ;;  %v880_v60 = vmul.f32 1.442695, %v873_v58  ;;  %v1654_v57 = vld [vmem:[%s2299_s8] ss:$0 sm:$0xff] }
 0x241   : > { %v888_v61 = vsel %vm781_vm1, %v1662_v59, 0.0 }
 0x242   : > { %1665 = vpow2.f32 %v880_v60  ;;  %889 = vadd.xlane.f32.xlu1 %v888_v61 }
 0x245   : > { %v860_v11 = vpop.xlane.xlu2 %859 }
 0x246   : > { %v1664_v62 = vpop.eup %1663  ;;  %v870_v12 = vsub.f32 %v798_v48, %v860_v11  ;;  %v1540_v48 = vld [vmem:[#allocation7 + $0x8] sm:$0xff]  ;;  %v1542_v11 = vld [vmem:[#allocation8 + $0x8] sm:$0xff] }
 0x247   : > { %v885_v63 = vsel %vm781_vm1, %v1664_v62, 0.0 }
 0x248   : > { %v1666_v0 = vpop.eup %1665  ;;  %886 = vadd.xlane.f32.xlu0 %v885_v63  ;;  %v874_v13 = vmul.f32 1.442695, %v870_v12  ;;  %v1915_v63 = vmov 32.0   ;;  %v1541_v12 = vld [vmem:[#allocation8] sm:$0xff] }
 0x249   : > { %v891_v1 = vsel %vm781_vm1, %v1666_v0, 0.0 }
 0x24a   : > { %892 = vadd.xlane.f32.xlu2 %v891_v1  ;;  %1667 = vpow2.f32 %v874_v13 }
 0x250   : > { %v1668_v15 = vpop.eup %1667 }
 0x251   : > { %v882_v16 = vsel %vm781_vm1, %v1668_v15, 0.0 }
 0x25b   : > { %958 = vrot.lane.b32.xlu1 %v957_v4, %s1911_s21 }
 0x25c   : > { %934 = vrot.lane.b32.xlu0 %v933_v6, %s1911_s21 }
 0x262   : > { %982 = vrot.lane.b32.xlu2 %v981_v9, %s1911_s21 }
 0x263   : > { %909 = vrot.lane.b32.xlu1 %v908_v10, %s1911_s21 }
 0x286   : > { %883 = vadd.xlane.f32.xlu0 %v882_v16 }
 0x2b5   : > { %v890_v18 = vpop.xlane.xlu1 %889 }
 0x2bb   : > { %v887_v19 = vpop.xlane.xlu0 %886 }
 0x2bd   : > { %v893_v17 = vpop.xlane.xlu2 %892 }
 0x2be   : > { %1669 = vrcp.f32 %v893_v17 }
 0x2bf   : > { %1671 = vrcp.f32 %v890_v18 }
 0x2c0   : > { %1673 = vrcp.f32 %v887_v19 }
 0x2c4   : > { %v1670_v20 = vpop.eup %1669 }
 0x2c5   : > { %v901_v14 = vmul.f32 %v1670_v20, %v1666_v0  ;;  %v983_v21 = vpop.permute.xlu2 %982  ;;  %v1672_v24 = vpop.eup %1671 }
 0x2c6   : > { %v988_v22 = vsel %vm914_vm2, %v983_v21, 0  ;;  %v1674_v25 = vpop.eup %1673  ;;  %v900_v26 = vmul.f32 %v1672_v24, %v1662_v59 }
 0x2c7   : > { %v905_v23 = vpack.c.bf16 %v901_v14, %v901_v14  ;;  %997 = vmatpush.bf16.msra.mxu1 %v988_v22  ;;  %v899_v27 = vmul.f32 %v1674_v25, %v1664_v62 }
 0x2c8   : > { %v904_v32 = vpack.c.bf16 %v900_v26, %v900_v26 }
 0x2c9   : > { %v903_v33 = vpack.c.bf16 %v899_v27, %v899_v27 }
 0x2ca   : > { %1494 = vmatmul.msk.bf16.vlgmr.msra.gmra.mxu1 %vm781_vm1, %v905_v23 }
 0x2cd   : > { %v959_v28 = vpop.permute.xlu1 %958 }
 0x2ce   : > { %v964_v29 = vsel %vm914_vm2, %v959_v28, 0  ;;  %v935_v30 = vpop.permute.xlu0 %934 }
 0x2cf   : > { %973 = vmatpush.bf16.msra.mxu0 %v964_v29  ;;  %v940_v31 = vsel %vm914_vm2, %v935_v30, 0 }
 0x2d0   : > { %949 = vmatpush.bf16.msrb.mxu3 %v940_v31 }
 0x2d2   : > { %1493 = vmatmul.msk.bf16.vlgmr.msra.gmra.mxu0 %vm781_vm1, %v904_v32 }
 0x2d3   : > { %1492 = vmatmul.msk.bf16.vlgmr.msrb.gmra.mxu3 %vm781_vm1, %v903_v33 }
 0x2d4   : > { %1143 = vmatpush.bf16.msra.mxu3 %v1542_v11 }
 0x2d5   : > { %v910_v34 = vpop.permute.xlu1 %909 }
 0x2d6   : > { %v916_v35 = vsel %vm914_vm2, %v910_v34, 0  ;;  %vm1238_vm2 = vcmask 523264  }
 0x2d7   : > { %925 = vmatpush.bf16.msrb.mxu2 %v916_v35  ;;  %v1655_v35 = vld [vmem:[%s2300_s9] ss:$0 sm:$0xff] }
 0x2d8   : > { %1144 = vmatpush.bf16.msra.mxu3 %v1541_v12 }
 0x2db   : > { %1050 = vmatpush.bf16.msra.mxu2 %v1540_v48  ;;  %v1657_v48 = vld [vmem:[%s2303_s12] ss:$0 sm:$0xff] }
 0x2df   : > { %1051 = vmatpush.bf16.msra.mxu2 %v1539_v49 }
 0x2f9   : > { %v884_v36 = vpop.xlane.xlu0 %883 }
 0x2fa   : > { %1675 = vrcp.f32 %v884_v36 }
 0x2fb   : > { %1677 = vrcp.f32 %v1915_v63 }
 0x300   : > { %v1676_v37 = vpop.eup %1675 }
 0x301   : > { %v898_v38 = vmul.f32 %v1676_v37, %v1668_v15  ;;  %v1678_v0 = vpop.eup %1677 }
 0x302   : > { %v1064_v1 = vmul.f32 32.0, %v1678_v0  ;;  %vm1068_vm5 = vweird.f32 %v1678_v0 }
 0x303   : > { %v902_v39 = vpack.c.bf16 %v898_v38, %v898_v38  ;;  %v1656_v38 = vld [vmem:[%s2301_s10] ss:$0 sm:$0xff] }
 0x304   : > { %v1065_v2 = vsub.f32 1.0, %v1064_v1 }
 0x305   : > { %1491 = vmatmul.msk.bf16.vlgmr.msrb.gmra.mxu2 %vm781_vm1, %v902_v39 }
 0x306   : > { %v1066_v3 = vmul.f32 %v1678_v0, %v1065_v2  ;;  %v1544_v2 = vld [vmem:[%s2304_s13 + $0x8] sm:$0xff] }
 0x308   : > { %v1067_v4 = vadd.f32 %v1678_v0, %v1066_v3 }
 0x30a   : > { %v2207_v6 = vsel %vm1068_vm5, %v1678_v0, %v1067_v4 }
 0x347   : > { %v999_v40 = vpop.f32.mrf.mxu1 }
 0x34f   : > { %v975_v41 = vpop.f32.mrf.mxu0  ;;  %v1001_v42 = vpop.f32.mrf.mxu1 }
 0x350   : > { %1008 = vrot.lane.b32.xlu1 %v975_v41, %s1912_s15  ;;  %v1916_v42 = vmov 1.4142135  }
 0x356   : > { %v951_v43 = vpop.f32.mrf.mxu3 }
 0x357   : > { %v977_v44 = vpop.f32.mrf.mxu0  ;;  %1004 = vrot.lane.b32.xlu2 %v951_v43, %s1913_s7  ;;  %s2342_s7 = sld [smem:[#allocation25_spill]] }
 0x35e   : > { %v953_v45 = vpop.f32.mrf.mxu3 }
 0x35f   : > { %1012 = vrot.lane.b32.xlu2 %v999_v40, %s1914_s1 }
 0x388   : > { %v927_v46 = vpop.f32.mrf.mxu2 }
 0x390   : > { %v929_v47 = vpop.f32.mrf.mxu2 }
 0x3b1   : > { %v1005_v50 = vpop.permute.xlu2 %1004 }
 0x3b2   : > { %v1015_v51 = vsel %vm781_vm1, %v927_v46, %v1005_v50 }
 0x3b9   : > { %v1013_v53 = vpop.permute.xlu2 %1012 }
 0x3c2   : > { %v1009_v52 = vpop.permute.xlu1 %1008 }
 0x3c3   : > { %v1017_v54 = vsel %vm1016_vm3, %v1015_v51, %v1009_v52 }
 0x3c4   : > { %v1019_v55 = vsel %vm1018_vm4, %v1017_v54, %v1013_v53 }
 0x3c5   : > { %v1020_v56 = vpack.c.bf16 %v1019_v55, %v1019_v55 }
 0x3c7   : > { %1503 = vmatmul.msk.bf16.vlgmr.msra.gmra.mxu2 %vm697_vm0, %v1020_v56  ;;  %v1546_v56 = vld [vmem:[%s2304_s13 + $0x18] sm:$0xff] }
 0x3c8   : > { %1246 = vmatpush.bf16.msrb.mxu0 %v1546_v56 }
 0x44a   : > { %v1053_v58 = vpop.f32.mrf.mxu2 }
 0x44b   : > { %v1054_v59 = vadd.f32 %v1654_v57, %v1053_v58 }
 0x44d   : > { %v1057_v60 = vadd.f32 %v1054_v59, %v2150_v5 }
 0x44f   : > { %v1060_v61 = vsel %vm697_vm0, %v1057_v60, 0.0 }
 0x450   : > { %1061 = vadd.xlane.f32.xlu1 %v1060_v61  ;;  %v1545_v61 = vld [vmem:[%s2304_s13 + $0x10] sm:$0xff] }
 0x451   : > { %1247 = vmatpush.bf16.msrb.mxu0 %v1545_v61 }
 0x452   : > { %v1055_v62 = vpop.f32.mrf.mxu2 }
 0x455   : > { %1248 = vmatpush.bf16.msrb.mxu0 %v1544_v2  ;;  %v1659_v2 = vld [vmem:[%s2341_s5] ss:$0 sm:$0xff] }
 0x4c3   : > { %v1062_v7 = vpop.xlane.xlu1 %1061 }
 0x4c4   : > { %v1070_v8 = vmul.f32 %v2207_v6, %v1062_v7 }
 0x4c6   : > { %v1071_v9 = vsub.f32 %v1057_v60, %v1070_v8  ;;  %v1543_v8 = vld [vmem:[%s2304_s13] sm:$0xff] }
 0x4c7   : > { %1249 = vmatpush.bf16.msrb.mxu0 %v1543_v8 }
 0x4c8   : > { %v1072_v10 = vmul.f32 %v1071_v9, %v1071_v9 }
 0x4ca   : > { %v1073_v5 = vsel %vm697_vm0, %v1072_v10, 0.0 }
 0x4cb   : > { %1074 = vadd.xlane.f32.xlu2 %v1073_v5 }
 0x53e   : > { %v1075_v13 = vpop.xlane.xlu2 %1074 }
 0x53f   : > { %v1076_v15 = vmul.f32 %v1075_v13, %v2207_v6 }
 0x541   : > { %v1077_v16 = vadd.f32 1e-12, %v1076_v15 }
 0x543   : > { %1679 = vrsqrt.f32 %v1077_v16  ;;  %vm1085_vm6 = vcmp.eq.f32.partialorder %v1077_v16, inf  ;;  %v1088_v23 = vand.u32 2147483648, %v1077_v16  ;;  %vm1087_vm7 = vcmp.eq.f32.partialorder %v1077_v16, 0.0 }
 0x549   : > { %v1680_v17 = vpop.eup %1679 }
 0x54a   : > { %v1079_v18 = vmul.f32 %v1680_v17, %v1077_v16 }
 0x54c   : > { %v1080_v19 = vmul.f32 %v1680_v17, %v1079_v18 }
 0x54e   : > { %v1081_v20 = vmul.f32 0.5, %v1080_v19 }
 0x550   : > { %v1082_v14 = vsub.f32 1.5, %v1081_v20 }
 0x552   : > { %v1083_v21 = vmul.f32 %v1680_v17, %v1082_v14 }
 0x554   : > { %v1084_v22 = vmul.f32 %v1083_v21, %v1077_v16 }
 0x556   : > { %v1086_v24 = vsel %vm1085_vm6, %v1077_v16, %v1084_v22 }
 0x557   : > { %v1089_v25 = vsel %vm1087_vm7, %v1088_v23, %v1086_v24 }
 0x558   : > { %1681 = vrcp.f32 %v1089_v25  ;;  %v1101_v29 = vand.u32 2147483648, %v1089_v25  ;;  %v1099_v31 = vand.u32 2147483647, %v1089_v25  ;;  %vm1095_vm9 = vweird.f32 %v1089_v25 }
 0x559   : > { %1683 = vrcp.f32 %v1916_v42 }
 0x55a   : > { %v1102_v33 = vor.u32 1.1754944e-38, %v1101_v29  ;;  %vm1100_vm11 = vcmp.eq.f32.partialorder %v1099_v31, 8.507059e+37 }
 0x55e   : > { %v1682_v26 = vpop.eup %1681 }
 0x55f   : > { %v1091_v27 = vmul.f32 %v1682_v26, %v1089_v25  ;;  %vm1096_vm8 = vweird.f32 %v1682_v26  ;;  %v1684_v43 = vpop.eup %1683 }
 0x560   : > { %vm1097_vm10 = vmor %vm1095_vm9, %vm1096_vm8  ;;  %v1152_v44 = vmul.f32 1.4142135, %v1684_v43  ;;  %vm1156_vm12 = vweird.f32 %v1684_v43  ;;  %vm1305_vm8 = vcmask 257024  }
 0x561   : > { %v1092_v28 = vsub.f32 1.0, %v1091_v27 }
 0x562   : > { %v1153_v45 = vsub.f32 1.0, %v1152_v44 }
 0x563   : > { %v1093_v30 = vmul.f32 %v1682_v26, %v1092_v28 }
 0x564   : > { %v1154_v46 = vmul.f32 %v1684_v43, %v1153_v45 }
 0x565   : > { %v1094_v32 = vadd.f32 %v1682_v26, %v1093_v30 }
 0x566   : > { %v1155_v47 = vadd.f32 %v1684_v43, %v1154_v46 }
 0x567   : > { %v1098_v34 = vsel %vm1097_vm10, %v1682_v26, %v1094_v32 }
 0x568   : > { %v1103_v36 = vsel %vm1100_vm11, %v1102_v33, %v1098_v34  ;;  %v1157_v50 = vsel %vm1156_vm12, %v1684_v43, %v1155_v47  ;;  %v1658_v34 = vld [vmem:[%s2340_s28] ss:$0 sm:$0xff]  ;;  %s1323_s28 = sshll.u32 %s1319_s2, 4  ;;  %s1324_s28 = int_to_ptr.hbm [resolvable:$true] %s1323_s28 }
 0x569   : > { %v1104_v37 = vmul.f32 %v1103_v36, %v1071_v9  ;;  %s1825_s14 = sshra.s32 %s1324_s28, 4  ;;  %s1826_s14 = int_to_ptr.hbm [resolvable:$true] %s1825_s14 }
 0x56a   : > { %s1827_s5 = scalar_lea.hbm %s1826_s14, 4  ;;  %p1832_p11 = scmp.lt.s32.totalorder %s1826_s14, %s2343_s30 }
 0x56b   : > { %v1108_v39 = vmul.f32 %v1655_v35, %v1104_v37  ;;  %p1828_p1 = scmp.ne.s32.totalorder %s1826_s14, %s1827_s5  ;;  %p1833_p12 = scmp.lt.s32.totalorder %s1831_s11, %s1827_s5 }
 0x56d   : > { %v2218_v40 = vadd.f32 %v1656_v38, %v1108_v39  ;;  %p1829_p9 = pnand %p1828_p1, %p2098_p4  ;;  %p1834_p13 = por %p1833_p12, %p1832_p11 }
 0x56f   : > { %v1113_v41 = vpack.c.bf16 %v2218_v40, %v2218_v40  ;;  %p1830_p10 = pneg %p1829_p9 }
 0x571   : > { %1512 = vmatmul.msk.bf16.vlgmr.msra.gmra.mxu3 %vm697_vm0, %v1113_v41  ;;  %p1835_p0 = pnand %p1834_p13, %p1830_p10 }
 0x5f4   : > { %v1146_v49 = vpop.f32.mrf.mxu3 }
 0x5f5   : > { %v1147_v51 = vadd.f32 %v1657_v48, %v1146_v49 }
 0x5f7   : > { %v1158_v52 = vmul.f32 %v1157_v50, %v1147_v51  ;;  %v1150_v30 = vmul.f32 0.5, %v1147_v51 }
 0x5f9   : > { %v1159_v53 = vmul.f32 %v1158_v52, %v1158_v52 }
 0x5fb   : > { %v1160_v54 = vmin.f32 %v1159_v53, 16.0 }
 0x5fc   : > { %v1148_v55 = vpop.f32.mrf.mxu3 }
 0x5fd   : > { %v1161_v57 = vmul.f32 2.1237322e-06, %v1160_v54  ;;  %v1172_v58 = vmul.f32 3.8918573e-05, %v1160_v54 }
 0x5ff   : > { %v1162_v59 = vadd.f32 0.00028619796, %v1161_v57  ;;  %v1173_v60 = vadd.f32 0.001143296, %v1172_v58 }
 0x601   : > { %v1163_v62 = vmul.f32 %v1162_v59, %v1160_v54  ;;  %v1174_v63 = vmul.f32 %v1173_v60, %v1160_v54 }
 0x603   : > { %v1175_v0 = vadd.f32 0.014752088, %v1174_v63  ;;  %v1164_v1 = vadd.f32 0.0036580483, %v1163_v62 }
 0x605   : > { %v1176_v3 = vmul.f32 %v1175_v0, %v1160_v54  ;;  %v1165_v7 = vmul.f32 %v1164_v1, %v1160_v54 }
 0x607   : > { %v1177_v4 = vadd.f32 0.112945676, %v1176_v3  ;;  %v1166_v5 = vadd.f32 0.05243302, %v1165_v7  ;;  %v1660_v7 = vld [vmem:[%s2342_s7] ss:$0 sm:$0xff] }
 0x609   : > { %v1178_v9 = vmul.f32 %v1177_v4, %v1160_v54  ;;  %v1167_v13 = vmul.f32 %v1166_v5, %v1160_v54 }
 0x60b   : > { %v1179_v10 = vadd.f32 0.4994258, %v1178_v9  ;;  %v1168_v15 = vadd.f32 0.18741608, %v1167_v13 }
 0x60d   : > { %v1180_v11 = vmul.f32 %v1179_v10, %v1160_v54  ;;  %v1169_v17 = vmul.f32 %v1168_v15, %v1160_v54 }
 0x60f   : > { %v1181_v12 = vadd.f32 1.0, %v1180_v11  ;;  %v1170_v14 = vadd.f32 1.1283791, %v1169_v17 }
 0x611   : > { %1685 = vrcp.f32 %v1181_v12  ;;  %v1193_v20 = vand.u32 2147483648, %v1181_v12  ;;  %v1191_v22 = vand.u32 2147483647, %v1181_v12  ;;  %vm1187_vm14 = vweird.f32 %v1181_v12 }
 0x612   : > { %v1171_v25 = vmul.f32 %v1170_v14, %v1158_v52 }
 0x613   : > { %v1194_v24 = vor.u32 1.1754944e-38, %v1193_v20  ;;  %vm1192_vm1 = vcmp.eq.f32.partialorder %v1191_v22, 8.507059e+37 }
 0x617   : > { %v1686_v16 = vpop.eup %1685 }
 0x618   : > { %v1183_v18 = vmul.f32 %v1686_v16, %v1181_v12  ;;  %vm1188_vm13 = vweird.f32 %v1686_v16 }
 0x619   : > { %vm1189_vm15 = vmor %vm1187_vm14, %vm1188_vm13 }
 0x61a   : > { %v1184_v19 = vsub.f32 1.0, %v1183_v18 }
 0x61c   : > { %v1185_v21 = vmul.f32 %v1686_v16, %v1184_v19 }
 0x61e   : > { %v1186_v23 = vadd.f32 %v1686_v16, %v1185_v21 }
 0x620   : > { %v1190_v26 = vsel %vm1189_vm15, %v1686_v16, %v1186_v23 }
 0x621   : > { %v1195_v27 = vsel %vm1192_vm1, %v1194_v24, %v1190_v26 }
 0x622   : > { %v1196_v28 = vmul.f32 %v1195_v27, %v1171_v25 }
 0x624   : > { %v1513_v29 = vclamps-f32 %v1196_v28, 1.0 }
 0x626   : > { %v1199_v31 = vadd.f32 1.0, %v1513_v29 }
 0x628   : > { %v1200_v32 = vmul.f32 %v1199_v31, %v1150_v30 }
 0x62a   : > { %v1201_v33 = vpack.c.bf16 %v1200_v32, %v1200_v32 }
 0x62c   : > { %1530 = vmatmul.msk.bf16.vlgmr.msrb.gmra.mxu0 %vm1238_vm2, %v1201_v33 }
 0x6a9   : > { %v1251_v35 = vpop.f32.mrf.mxu0 }
 0x6aa   : > { %v1252_v36 = vadd.f32 %v1658_v34, %v1251_v35 }
 0x6ac   : > { %v1255_v37 = vadd.f32 %v1252_v36, %v2218_v40 }
 0x6ae   : > { %v1258_v38 = vsel %vm697_vm0, %v1255_v37, 0.0 }
 0x6af   : > { %1259 = vadd.xlane.f32.xlu0 %v1258_v38 }
 0x6b1   : > { %v1253_v39 = vpop.f32.mrf.mxu0 }
 0x722   : > { %v1260_v41 = vpop.xlane.xlu0 %1259 }
 0x723   : > { %v1261_v42 = vmul.f32 %v1260_v41, %v2207_v6 }
 0x725   : > { %v1262_v43 = vsub.f32 %v1255_v37, %v1261_v42 }
 0x727   : > { %v1263_v44 = vmul.f32 %v1262_v43, %v1262_v43 }
 0x729   : > { %v1264_v45 = vsel %vm697_vm0, %v1263_v44, 0.0 }
 0x72a   : > { %1265 = vadd.xlane.f32.xlu0 %v1264_v45 }
 0x79d   : > { %v1266_v46 = vpop.xlane.xlu0 %1265 }
 0x79e   : > { %v1267_v47 = vmul.f32 %v1266_v46, %v2207_v6 }
 0x7a0   : > { %v1268_v48 = vadd.f32 1e-12, %v1267_v47 }
 0x7a2   : > { %1687 = vrsqrt.f32 %v1268_v48  ;;  %vm1276_vm3 = vcmp.eq.f32.partialorder %v1268_v48, inf  ;;  %v1279_v55 = vand.u32 2147483648, %v1268_v48  ;;  %vm1278_vm4 = vcmp.eq.f32.partialorder %v1268_v48, 0.0 }
 0x7a8   : > { %v1688_v49 = vpop.eup %1687 }
 0x7a9   : > { %v1270_v50 = vmul.f32 %v1688_v49, %v1268_v48 }
 0x7ab   : > { %v1271_v40 = vmul.f32 %v1688_v49, %v1270_v50 }
 0x7ad   : > { %v1272_v51 = vmul.f32 0.5, %v1271_v40 }
 0x7af   : > { %v1273_v52 = vsub.f32 1.5, %v1272_v51 }
 0x7b1   : > { %v1274_v53 = vmul.f32 %v1688_v49, %v1273_v52 }
 0x7b3   : > { %v1275_v54 = vmul.f32 %v1274_v53, %v1268_v48 }
 0x7b5   : > { %v1277_v56 = vsel %vm1276_vm3, %v1268_v48, %v1275_v54 }
 0x7b6   : > { %v1280_v57 = vsel %vm1278_vm4, %v1279_v55, %v1277_v56 }
 0x7b7   : > { %1689 = vrcp.f32 %v1280_v57  ;;  %v1292_v60 = vand.u32 2147483648, %v1280_v57  ;;  %v1290_v62 = vand.u32 2147483647, %v1280_v57  ;;  %vm1286_vm5 = vweird.f32 %v1280_v57 }
 0x7b9   : > { %v1293_v0 = vor.u32 1.1754944e-38, %v1292_v60  ;;  %vm1291_vm7 = vcmp.eq.f32.partialorder %v1290_v62, 8.507059e+37 }
 0x7bd   : > { %v1690_v58 = vpop.eup %1689 }
 0x7be   : > { %v1282_v59 = vmul.f32 %v1690_v58, %v1280_v57  ;;  %vm1287_vm0 = vweird.f32 %v1690_v58 }
 0x7bf   : > { %vm1288_vm6 = vmor %vm1286_vm5, %vm1287_vm0 }
 0x7c0   : > { %v1283_v6 = vsub.f32 1.0, %v1282_v59 }
 0x7c2   : > { %v1284_v61 = vmul.f32 %v1690_v58, %v1283_v6 }
 0x7c4   : > { %v1285_v63 = vadd.f32 %v1690_v58, %v1284_v61 }
 0x7c6   : > { %v1289_v1 = vsel %vm1288_vm6, %v1690_v58, %v1285_v63 }
 0x7c7   : > { %v1294_v3 = vsel %vm1291_vm7, %v1293_v0, %v1289_v1 }
 0x7c8   : > { %v1295_v4 = vmul.f32 %v1294_v3, %v1262_v43 }
 0x7ca   : > { %v1299_v8 = vmul.f32 %v1659_v2, %v1295_v4 }
 0x7cc   : > { %v1303_v9 = vadd.f32 %v1660_v7, %v1299_v8 }
 0x7ce   : > { %v1304_v10 = vpack.c.bf16 %v1303_v9, %v1303_v9 }
 0x7d0   : > { %1306 = vst.msk [vmem:[%s659_s27] sm:$0xf] %vm1305_vm8, %v1304_v10 }
 0x7d1   : > { %1838 = shalt.err (!%p1835_p0)
}
 0x7d2   : > { %1561 = dma.vmem_to_hbm [thread:$0]  (%p2098_p4), %s1322_s19, 64, %s1324_s28, %s1308_s17  }
 0x7d3 PF: > { %s1335_s22 = sand.u32 1, %s1881_s24   ;;  %p1578_p2 = pnand %p1461_p6, %p2106_p7 }
 0x7d4   : > { %s1336_s1 = scalar_lea.sflag [#allocation4], %s1335_s22 }
 0x7d5   : > { %p1579_p5 = pneg %p1578_p2 }
 0x7d7   : > { %1876 = dma.done.wait (%p1579_p5), %s1336_s1, 64  }
 0x7d8   : > { %1878 = vsyncadd (%p1579_p5), %s1336_s1, 4294967232  ;;  %s35_s29 = sadd.s32 1, %s1901_s29   ;;  %s2344_s27 = sld [smem:[#allocation15_spill]] }
 0x7d9   : > { %p32_p8 = scmp.ge.s32.totalorder %s35_s29, 4   ;;  %s2345_s28 = sld [smem:[#allocation16_spill]] }
 0x7da   : > { %s2346_s24 = smov %s1885_s25  ;;  %s2347_s25 = smov %s1889_s26 }
 0x7db   : > { %s2348_s26 = smov %s2104_s0  ;;  %34 = sbr.rel (!%p32_p8) target bundleno = 19 (0x13), region = 151 }
 0x7e0   :  { %1342 = vsyncpa [#allocation3], 1 }
 0x7e1   :  { %1344 = vsyncpa [#allocation3 + $0x1], 1 }
 0x7e2   :  { %1345 = vsyncpa [#allocation6], 1 }
 0x7e3   :  { %1346 = vsyncpa [#allocation9], 1 }
 0x7e4   :  { %1347 = vsyncpa [#allocation4], 1 }
 0x7e5   :  { %1349 = vsyncpa [#allocation4 + $0x1], 1 }

</bundles_post_ra>
